<compile_context>
chip_gen: v6e
topology: v6e:2x2x1
jax: 0.10.0
libtpu: 0.0.40
codegen_flags: <defaults>
</compile_context>

<pallas_src>
import jax
import jax.numpy as jnp
from jax.experimental import pallas as pl
from jax.experimental.pallas import tpu as pltpu


def _round_up(x: int, m: int) -> int:
    return (x + m - 1) // m * m


# ----------------------------------------------------------------------------
# One-time parameter preparation (hoisted out of the forward pass).
# ----------------------------------------------------------------------------
def prepare_tcn_params(params, channels, kernel_size):
    """Pads channels to a sublane multiple, concatenates the K conv taps into a
    single (Cpad, K*Cpad) matrix per conv, and pre-casts matmul operands to
    bf16.  Returns (flat param list, per-block static config, Cpad)."""
    K = kernel_size
    Cpad = _round_up(max(channels), 8)          # sublane multiple (f32 path)
    flat, cfg = [], []
    for i, p in enumerate(params):
        cin, cout = channels[i], channels[i + 1]
        w1c = jnp.zeros((Cpad, K * Cpad), jnp.float32)
        w2c = jnp.zeros((Cpad, K * Cpad), jnp.float32)
        for k in range(K):
            w1c = w1c.at[:cout, k * Cpad:k * Cpad + cin].set(p["w1"][:, :, k])
            w2c = w2c.at[:cout, k * Cpad:k * Cpad + cout].set(p["w2"][:, :, k])
        b1c = jnp.zeros((Cpad, 1), jnp.float32).at[:cout, 0].set(p["b1"])
        b2c = jnp.zeros((Cpad, 1), jnp.float32).at[:cout, 0].set(p["b2"])
        has_ds = p.get("wd") is not None
        blk = [w1c.astype(jnp.bfloat16), b1c, w2c.astype(jnp.bfloat16), b2c]
        if has_ds:
            wdc = jnp.zeros((Cpad, Cpad), jnp.float32).at[:cout, :cin].set(
                p["wd"][:, :, 0])
            bdc = jnp.zeros((Cpad, 1), jnp.float32).at[:cout, 0].set(p["bd"])
            blk += [wdc.astype(jnp.bfloat16), bdc]
        flat += blk
        cfg.append({"dilation": 2 ** i, "has_ds": has_ds})
    return flat, cfg, Cpad


# ----------------------------------------------------------------------------
# Fused whole-layer kernel
# ----------------------------------------------------------------------------
def _make_tcn_kernel(block_cfg, K, P, Cpad, W):
    """conv1 -> ReLU -> conv2 -> ReLU -> (+res) -> ReLU for every block, all in
    VMEM.  Activation slab layout: (Cpad, P + W) 'ext' form, i.e. P leading
    zero columns followed by per-sequence [P zeros | data] regions."""
    n_blocks = len(block_cfg)

    def kernel(slab_ref, mask_ref, *rest):
        out_ref, act_ref, tap_ref = rest[-3], rest[-2], rest[-1]
        prefs = rest[:-3]

        mask = mask_ref[...]                        # (1, W) f32 validity mask

        # Zero ONLY the causal-pad columns of the activation scratch, once.
        if P > 0:
            @pl.when(pl.program_id(0) == 0)
            def _():
                act_ref[:, :P] = jnp.zeros((Cpad, P), jnp.float32)

        idx = 0
        out_val = None
        for bi, cfg in enumerate(block_cfg):
            d = cfg["dilation"]
            p = (K - 1) * d                         # this block's causal pad
            off = P - p                             # shift inside the ext slab

            w1 = prefs[idx][...]; b1 = prefs[idx + 1][...]
            w2 = prefs[idx + 2][...]; b2 = prefs[idx + 3][...]
            idx += 4
            if cfg["has_ds"]:
                wd = prefs[idx][...]; bd = prefs[idx + 1][...]
                idx += 2
            else:
                wd = bd = None

            src = slab_ref if bi == 0 else act_ref

            # Residual input (the real slab columns of this block's input).
            x_in = src[:, P:P + W]                  # (Cpad, W) f32

            # ---- conv1: stage K dilated taps -> ONE deep-contraction matmul
            for k in range(K):
                tap_ref[k * Cpad:(k + 1) * Cpad, :] = src[:, off + k * d:
                                                          off + k * d + W]
            h1 = jnp.dot(w1, tap_ref[...].astype(jnp.bfloat16),
                         preferred_element_type=jnp.float32) + b1
            h1 = jnp.maximum(h1, 0.0) * mask        # zero causal-pad columns
            # TODO(synk): nn.Dropout(p=0.2) omitted — inference identity.

            # ---- conv2 over h1 (same dilation / causal pad) ----------------
            act_ref[:, P:P + W] = h1
            for k in range(K):
                tap_ref[k * Cpad:(k + 1) * Cpad, :] = act_ref[:, off + k * d:
                                                              off + k * d + W]
            h2 = jnp.dot(w2, tap_ref[...].astype(jnp.bfloat16),
                         preferred_element_type=jnp.float32) + b2
            h2 = jnp.maximum(h2, 0.0)
            # TODO(synk): second nn.Dropout(p=0.2) omitted.

            # ---- residual (optional 1x1 downsample) + final ReLU -----------
            if wd is not None:
                res = jnp.dot(wd, x_in.astype(jnp.bfloat16),
                              preferred_element_type=jnp.float32) + bd
            else:
                res = x_in
            out_val = jnp.maximum(h2 + res, 0.0) * mask

            if bi < n_blocks - 1:                   # feed the next block
                act_ref[:, P:P + W] = out_val

        out_ref[...] = out_val.astype(out_ref.dtype)

    return kernel


# ----------------------------------------------------------------------------
# Forward wrapper: lane-dense slab layout + single pallas_call
# ----------------------------------------------------------------------------
def tcn_layer_forward(x, flat_params, block_cfg, Cpad, kernel_size, out_channels):
    """x: (N, Cin, L) -> (N, Cout, L), PyTorch TCNLayer semantics (eval mode)."""
    N, Cin, L = x.shape
    K = kernel_size
    P = (K - 1) * max(c["dilation"] for c in block_cfg)   # max causal pad
    Lp = P + L                                             # per-sequence stride

    # Fold the whole batch into the lane axis (lane-dense slab).  For large N
    # this becomes a batch-tile grid axis ("parallel") feeding both v7x cores.
    NB, T = N, 1
    W = _round_up(NB * Lp, 128)                            # lane-dense width
    EW = P + W                                             # 'ext' slab width

    # (N, Cin, L) -> ext slab (T, Cpad, EW): channels zero-padded to Cpad, each
    # sequence left-padded with P zeros, plus P leading + lane-padding zeros.
    xp = jnp.pad(x.astype(jnp.float32), ((0, 0), (0, Cpad - Cin), (P, 0)))
    slab = jnp.transpose(xp, (1, 0, 2)).reshape(Cpad, NB * Lp)
    slab = jnp.pad(slab, ((0, 0), (P, W - NB * Lp))).reshape(T, Cpad, EW)

    # Validity mask over lane columns: 1 on real data columns, 0 on causal-pad
    # and lane-padding columns.
    col = jnp.arange(W)
    mask = ((col % Lp >= P) & (col < NB * Lp)).astype(jnp.float32)
    mask = mask.reshape(T, 1, W)

    kernel = _make_tcn_kernel(block_cfg, K, P, Cpad, W)

    in_specs = [
        pl.BlockSpec((None, Cpad, EW), lambda t: (t, 0, 0)),   # input slab
        pl.BlockSpec((None, 1, W), lambda t: (t, 0, 0)),       # lane mask
    ]
    args = [slab, mask]
    for p_arr in flat_params:                                   # weights/biases
        in_specs.append(
            pl.BlockSpec(p_arr.shape, lambda t, n=p_arr.ndim: (0,) * n))
        args.append(p_arr)

    out_slab = pl.pallas_call(
        kernel,
        out_shape=jax.ShapeDtypeStruct((T, Cpad, W), x.dtype),
        grid_spec=pltpu.PrefetchScalarGridSpec(
            num_scalar_prefetch=0,
            grid=(T,),
            in_specs=in_specs,
            out_specs=pl.BlockSpec((None, Cpad, W), lambda t: (t, 0, 0)),
            scratch_shapes=[
                pltpu.VMEM((Cpad, EW), jnp.float32),       # activation slab (ext)
                pltpu.VMEM((K * Cpad, W), jnp.float32),    # staged conv taps
            ],
        ),
        compiler_params=pltpu.CompilerParams(
            dimension_semantics=("parallel",),
        ),
    )(*args)

    # Extract (N, Cout, L) from the lane-dense output slab (layout plumbing).
    o = out_slab[:, :, :NB * Lp].reshape(T, Cpad, NB, Lp)
    o = o[:, :out_channels, :, P:]                         # (T, Cout, NB, L)
    o = jnp.transpose(o, (0, 2, 1, 3)).reshape(T * NB, out_channels, L)
    return o[:N]


# ----------------------------------------------------------------------------
# Pure-JAX references (PyTorch Conv1d + Chomp1d + ReLU + residual, eval mode).
# `bf16_inputs=True` mirrors the kernel's bf16 MXU operands for a tight check.
# ----------------------------------------------------------------------------
def _conv1d_causal_ref(x, w, b, dilation, bf16_inputs):
    N, Cin, L = x.shape
    Cout, _, Kk = w.shape
    pad = (Kk - 1) * dilation
    xp = jnp.pad(x.astype(jnp.float32), ((0, 0), (0, 0), (pad, 0)))
    out = jnp.broadcast_to(b.astype(jnp.float32)[None, :, None], (N, Cout, L))
    for k in range(Kk):
        wk = w[:, :, k]
        tap = xp[:, :, k * dilation: k * dilation + L]
        if bf16_inputs:
            wk = wk.astype(jnp.bfloat16)
            tap = tap.astype(jnp.bfloat16)
        out = out + jnp.einsum("oc,ncl->nol", wk, tap,
                               preferred_element_type=jnp.float32)
    return out


def _temporal_block_ref(x, w1, b1, w2, b2, wd, bd, dilation, bf16_inputs):
    h1 = jnp.maximum(_conv1d_causal_ref(x, w1, b1, dilation, bf16_inputs), 0.0)
    h2 = jnp.maximum(_conv1d_causal_ref(h1, w2, b2, dilation, bf16_inputs), 0.0)
    if wd is None:
        res = x.astype(jnp.float32)
    else:
        wdm = wd[:, :, 0]
        xin = x.astype(jnp.float32)
        if bf16_inputs:
            wdm = wdm.astype(jnp.bfloat16)
            xin = xin.astype(jnp.bfloat16)
        res = jnp.einsum("oc,ncl->nol", wdm, xin,
                         preferred_element_type=jnp.float32)
        res = res + bd.astype(jnp.float32)[None, :, None]
    return jnp.maximum(h2 + res, 0.0).astype(x.dtype)


def _tcn_layer_ref(x, params, kernel_size, bf16_inputs):
    out = x
    for i, p in enumerate(params):
        out = _temporal_block_ref(out, p["w1"], p["b1"], p["w2"], p["b2"],
                                  p.get("wd"), p.get("bd"), 2 ** i, bf16_inputs)
    return out


# ----------------------------------------------------------------------------
# Demo / self-test
# ----------------------------------------------------------------------------
if __name__ == "__main__":
    key = jax.random.PRNGKey(0)
    N, L = 2, 16
    channels = [4, 8, 8]          # -> 2 TemporalBlocks, dilations 1 and 2
    kernel_size = 2

    keys = jax.random.split(key, 16)
    params = []
    kidx = 0
    for i in range(len(channels) - 1):
        in_ch, out_ch = channels[i], channels[i + 1]
        p = {
            "w1": 0.3 * jax.random.normal(keys[kidx + 0],
                                          (out_ch, in_ch, kernel_size), jnp.float32),
            "b1": 0.1 * jax.random.normal(keys[kidx + 1], (out_ch,), jnp.float32),
            "w2": 0.3 * jax.random.normal(keys[kidx + 2],
                                          (out_ch, out_ch, kernel_size), jnp.float32),
            "b2": 0.1 * jax.random.normal(keys[kidx + 3], (out_ch,), jnp.float32),
        }
        if in_ch != out_ch:
            p["wd"] = 0.3 * jax.random.normal(keys[kidx + 4],
                                              (out_ch, in_ch, 1), jnp.float32)
            p["bd"] = 0.1 * jax.random.normal(keys[kidx + 5], (out_ch,), jnp.float32)
        kidx += 6
        params.append(p)

    x = jax.random.normal(keys[-1], (N, channels[0], L), dtype=jnp.float32)

    # One-time parameter prep (channel padding, tap concat, bf16 cast).
    flat_params, block_cfg, Cpad = prepare_tcn_params(params, channels, kernel_size)

    out = tcn_layer_forward(x, flat_params, block_cfg, Cpad,
                            kernel_size, channels[-1])
    out = jax.block_until_ready(out)

    # Tight check against a reference that mirrors the kernel's bf16 MXU inputs.
    ref_bf16 = _tcn_layer_ref(x, params, kernel_size, bf16_inputs=True)
    # Loose sanity check against the full-f32 PyTorch-equivalent reference
    # (tolerance widened because the kernel uses bf16 MXU operands).
    ref_f32 = _tcn_layer_ref(x, params, kernel_size, bf16_inputs=False)

    assert out.shape == ref_f32.shape, (out.shape, ref_f32.shape)
    err_bf16 = float(jnp.max(jnp.abs(out - ref_bf16)))
    err_f32 = float(jnp.max(jnp.abs(out - ref_f32)))
    assert jnp.allclose(out, ref_bf16, rtol=1e-2, atol=1e-2), \
        f"bf16-matched max abs err = {err_bf16}"
    assert jnp.allclose(out, ref_f32, rtol=2.5e-1, atol=2.5e-1), \
        f"f32 max abs err = {err_f32}"

    print("KERNEL_OK")
</pallas_src>

<mosaic_0001>
module attributes {stable_mosaic.version = 11 : i64} {
  func.func @kernel(%arg0: i32, %arg1: memref<1x8x130xf32, #tpu.memory_space<vmem>>, %arg2: memref<1x1x128xf32, #tpu.memory_space<vmem>>, %arg3: memref<8x16xbf16, #tpu.memory_space<vmem>>, %arg4: memref<8x1xf32, #tpu.memory_space<vmem>>, %arg5: memref<8x16xbf16, #tpu.memory_space<vmem>>, %arg6: memref<8x1xf32, #tpu.memory_space<vmem>>, %arg7: memref<8x8xbf16, #tpu.memory_space<vmem>>, %arg8: memref<8x1xf32, #tpu.memory_space<vmem>>, %arg9: memref<8x16xbf16, #tpu.memory_space<vmem>>, %arg10: memref<8x1xf32, #tpu.memory_space<vmem>>, %arg11: memref<8x16xbf16, #tpu.memory_space<vmem>>, %arg12: memref<8x1xf32, #tpu.memory_space<vmem>>, %arg13: memref<1x8x128xf32, #tpu.memory_space<vmem>>, %arg14: memref<8x130xf32, #tpu.memory_space<vmem>>, %arg15: memref<16x128xf32, #tpu.memory_space<vmem>>) attributes {dimension_semantics = [#tpu.dimension_semantics<parallel>], iteration_bounds = array<i64: 1>, scalar_prefetch = 0 : i64, scratch_operands = 2 : i64, tpu.core_type = #tpu.core_type<tc>, window_params = [{transform_indices = @transform_0, window_bounds = array<i64: 1, 8, 130>}, {transform_indices = @transform_1, window_bounds = array<i64: 1, 1, 128>}, {pipeline_mode = #tpu.pipeline_mode<synchronous>, transform_indices = @transform_2, window_bounds = array<i64: 8, 16>}, {pipeline_mode = #tpu.pipeline_mode<synchronous>, transform_indices = @transform_3, window_bounds = array<i64: 8, 1>}, {pipeline_mode = #tpu.pipeline_mode<synchronous>, transform_indices = @transform_4, window_bounds = array<i64: 8, 16>}, {pipeline_mode = #tpu.pipeline_mode<synchronous>, transform_indices = @transform_5, window_bounds = array<i64: 8, 1>}, {pipeline_mode = #tpu.pipeline_mode<synchronous>, transform_indices = @transform_6, window_bounds = array<i64: 8, 8>}, {pipeline_mode = #tpu.pipeline_mode<synchronous>, transform_indices = @transform_7, window_bounds = array<i64: 8, 1>}, {pipeline_mode = #tpu.pipeline_mode<synchronous>, transform_indices = @transform_8, window_bounds = array<i64: 8, 16>}, {pipeline_mode = #tpu.pipeline_mode<synchronous>, transform_indices = @transform_9, window_bounds = array<i64: 8, 1>}, {pipeline_mode = #tpu.pipeline_mode<synchronous>, transform_indices = @transform_10, window_bounds = array<i64: 8, 16>}, {pipeline_mode = #tpu.pipeline_mode<synchronous>, transform_indices = @transform_11, window_bounds = array<i64: 8, 1>}, {transform_indices = @transform_12, window_bounds = array<i64: 1, 8, 128>}]} {
    %c0 = arith.constant 0 : index
    %c0_0 = arith.constant 0 : index
    %c0_1 = arith.constant 0 : index
    %0 = vector.load %arg2[%c0, %c0_0, %c0_1] : memref<1x1x128xf32, #tpu.memory_space<vmem>>, vector<1x1x128xf32>
    %1 = vector.shape_cast %0 : vector<1x1x128xf32> to vector<1x128xf32>
    %c0_i32 = arith.constant 0 : i32
    %2 = arith.cmpi eq, %arg0, %c0_i32 : i32
    %3 = arith.extui %2 : i1 to i32
    %c0_i32_2 = arith.constant 0 : i32
    %4 = arith.cmpi ne, %3, %c0_i32_2 : i32
    scf.if %4 {
      %cst_86 = arith.constant 0.000000e+00 : f32
      %88 = vector.broadcast %cst_86 : f32 to vector<8x2xf32>
      %c0_87 = arith.constant 0 : index
      %c0_88 = arith.constant 0 : index
      %89 = vector.load %arg14[%c0_87, %c0_88] : memref<8x130xf32, #tpu.memory_space<vmem>>, vector<8x2xf32>
      tpu.vector_store %arg14[%c0_87, %c0_88], %88 {strides = array<i32>} : memref<8x130xf32, #tpu.memory_space<vmem>>, vector<8x2xf32>,
    } else {
    }
    %c0_3 = arith.constant 0 : index
    %c0_4 = arith.constant 0 : index
    %5 = vector.load %arg3[%c0_3, %c0_4] : memref<8x16xbf16, #tpu.memory_space<vmem>>, vector<8x16xbf16>
    %c0_5 = arith.constant 0 : index
    %c0_6 = arith.constant 0 : index
    %6 = vector.load %arg4[%c0_5, %c0_6] : memref<8x1xf32, #tpu.memory_space<vmem>>, vector<8x1xf32>
    %c0_7 = arith.constant 0 : index
    %c0_8 = arith.constant 0 : index
    %7 = vector.load %arg5[%c0_7, %c0_8] : memref<8x16xbf16, #tpu.memory_space<vmem>>, vector<8x16xbf16>
    %c0_9 = arith.constant 0 : index
    %c0_10 = arith.constant 0 : index
    %8 = vector.load %arg6[%c0_9, %c0_10] : memref<8x1xf32, #tpu.memory_space<vmem>>, vector<8x1xf32>
    %c0_11 = arith.constant 0 : index
    %c0_12 = arith.constant 0 : index
    %9 = vector.load %arg7[%c0_11, %c0_12] : memref<8x8xbf16, #tpu.memory_space<vmem>>, vector<8x8xbf16>
    %c0_13 = arith.constant 0 : index
    %c0_14 = arith.constant 0 : index
    %10 = vector.load %arg8[%c0_13, %c0_14] : memref<8x1xf32, #tpu.memory_space<vmem>>, vector<8x1xf32>
    %c0_15 = arith.constant 0 : index
    %c0_16 = arith.constant 0 : index
    %c2 = arith.constant 2 : index
    %11 = vector.load %arg1[%c0_15, %c0_16, %c2] : memref<1x8x130xf32, #tpu.memory_space<vmem>>, vector<1x8x128xf32>
    %12 = vector.shape_cast %11 : vector<1x8x128xf32> to vector<8x128xf32>
    %c0_17 = arith.constant 0 : index
    %c0_18 = arith.constant 0 : index
    %c1 = arith.constant 1 : index
    %13 = vector.load %arg1[%c0_17, %c0_18, %c1] : memref<1x8x130xf32, #tpu.memory_space<vmem>>, vector<1x8x128xf32>
    %14 = vector.shape_cast %13 : vector<1x8x128xf32> to vector<8x128xf32>
    %c0_19 = arith.constant 0 : index
    %c0_20 = arith.constant 0 : index
    %15 = vector.load %arg15[%c0_19, %c0_20] : memref<16x128xf32, #tpu.memory_space<vmem>>, vector<8x128xf32>
    tpu.vector_store %arg15[%c0_19, %c0_20], %14 {strides = array<i32>} : memref<16x128xf32, #tpu.memory_space<vmem>>, vector<8x128xf32>,
    %c0_21 = arith.constant 0 : index
    %c0_22 = arith.constant 0 : index
    %c2_23 = arith.constant 2 : index
    %16 = vector.load %arg1[%c0_21, %c0_22, %c2_23] : memref<1x8x130xf32, #tpu.memory_space<vmem>>, vector<1x8x128xf32>
    %17 = vector.shape_cast %16 : vector<1x8x128xf32> to vector<8x128xf32>
    %c8 = arith.constant 8 : index
    %c0_24 = arith.constant 0 : index
    %18 = vector.load %arg15[%c8, %c0_24] : memref<16x128xf32, #tpu.memory_space<vmem>>, vector<8x128xf32>
    tpu.vector_store %arg15[%c8, %c0_24], %17 {strides = array<i32>} : memref<16x128xf32, #tpu.memory_space<vmem>>, vector<8x128xf32>,
    %c0_25 = arith.constant 0 : index
    %c0_26 = arith.constant 0 : index
    %19 = vector.load %arg15[%c0_25, %c0_26] : memref<16x128xf32, #tpu.memory_space<vmem>>, vector<16x128xf32>
    %20 = arith.truncf %19 : vector<16x128xf32> to vector<16x128xbf16>
    %cst = arith.constant dense<0.000000e+00> : vector<8x128xf32>
    %21 = tpu.matmul %5, %20, %cst {dimension_numbers = #tpu.dot_dimension_numbers<[1], [0], [0], [1], [0, 0, 1, 1], [], []>} : vector<8x16xbf16>, vector<16x128xbf16>, vector<8x128xf32> -> vector<8x128xf32>
    %22 = vector.broadcast %6 : vector<8x1xf32> to vector<8x128xf32>
    %23 = arith.addf %21, %22 : vector<8x128xf32>
    %cst_27 = arith.constant 0.000000e+00 : f32
    %24 = vector.broadcast %cst_27 : f32 to vector<8x128xf32>
    %25 = arith.maximumf %23, %24 : vector<8x128xf32>
    %26 = vector.broadcast %1 : vector<1x128xf32> to vector<8x128xf32>
    %27 = arith.mulf %25, %26 : vector<8x128xf32>
    %c0_28 = arith.constant 0 : index
    %c2_29 = arith.constant 2 : index
    %28 = vector.load %arg14[%c0_28, %c2_29] : memref<8x130xf32, #tpu.memory_space<vmem>>, vector<8x128xf32>
    tpu.vector_store %arg14[%c0_28, %c2_29], %27 {strides = array<i32>} : memref<8x130xf32, #tpu.memory_space<vmem>>, vector<8x128xf32>,
    %c0_30 = arith.constant 0 : index
    %c1_31 = arith.constant 1 : index
    %29 = vector.load %arg14[%c0_30, %c1_31] : memref<8x130xf32, #tpu.memory_space<vmem>>, vector<8x128xf32>
    %c0_32 = arith.constant 0 : index
    %c0_33 = arith.constant 0 : index
    %30 = vector.load %arg15[%c0_32, %c0_33] : memref<16x128xf32, #tpu.memory_space<vmem>>, vector<8x128xf32>
    tpu.vector_store %arg15[%c0_32, %c0_33], %29 {strides = array<i32>} : memref<16x128xf32, #tpu.memory_space<vmem>>, vector<8x128xf32>,
    %c0_34 = arith.constant 0 : index
    %c2_35 = arith.constant 2 : index
    %31 = vector.load %arg14[%c0_34, %c2_35] : memref<8x130xf32, #tpu.memory_space<vmem>>, vector<8x128xf32>
    %c8_36 = arith.constant 8 : index
    %c0_37 = arith.constant 0 : index
    %32 = vector.load %arg15[%c8_36, %c0_37] : memref<16x128xf32, #tpu.memory_space<vmem>>, vector<8x128xf32>
    tpu.vector_store %arg15[%c8_36, %c0_37], %31 {strides = array<i32>} : memref<16x128xf32, #tpu.memory_space<vmem>>, vector<8x128xf32>,
    %c0_38 = arith.constant 0 : index
    %c0_39 = arith.constant 0 : index
    %33 = vector.load %arg15[%c0_38, %c0_39] : memref<16x128xf32, #tpu.memory_space<vmem>>, vector<16x128xf32>
    %34 = arith.truncf %33 : vector<16x128xf32> to vector<16x128xbf16>
    %cst_40 = arith.constant dense<0.000000e+00> : vector<8x128xf32>
    %35 = tpu.matmul %7, %34, %cst_40 {dimension_numbers = #tpu.dot_dimension_numbers<[1], [0], [0], [1], [0, 0, 1, 1], [], []>} : vector<8x16xbf16>, vector<16x128xbf16>, vector<8x128xf32> -> vector<8x128xf32>
    %36 = vector.broadcast %8 : vector<8x1xf32> to vector<8x128xf32>
    %37 = arith.addf %35, %36 : vector<8x128xf32>
    %cst_41 = arith.constant 0.000000e+00 : f32
    %38 = vector.broadcast %cst_41 : f32 to vector<8x128xf32>
    %39 = arith.maximumf %37, %38 : vector<8x128xf32>
    %40 = arith.truncf %12 : vector<8x128xf32> to vector<8x128xbf16>
    %cst_42 = arith.constant dense<0.000000e+00> : vector<8x128xf32>
    %41 = tpu.matmul %9, %40, %cst_42 {dimension_numbers = #tpu.dot_dimension_numbers<[1], [0], [0], [1], [0, 0, 1, 1], [], []>} : vector<8x8xbf16>, vector<8x128xbf16>, vector<8x128xf32> -> vector<8x128xf32>
    %42 = vector.broadcast %10 : vector<8x1xf32> to vector<8x128xf32>
    %43 = arith.addf %41, %42 : vector<8x128xf32>
    %44 = arith.addf %39, %43 : vector<8x128xf32>
    %cst_43 = arith.constant 0.000000e+00 : f32
    %45 = vector.broadcast %cst_43 : f32 to vector<8x128xf32>
    %46 = arith.maximumf %44, %45 : vector<8x128xf32>
    %47 = vector.broadcast %1 : vector<1x128xf32> to vector<8x128xf32>
    %48 = arith.mulf %46, %47 : vector<8x128xf32>
    %c0_44 = arith.constant 0 : index
    %c2_45 = arith.constant 2 : index
    %49 = vector.load %arg14[%c0_44, %c2_45] : memref<8x130xf32, #tpu.memory_space<vmem>>, vector<8x128xf32>
    tpu.vector_store %arg14[%c0_44, %c2_45], %48 {strides = array<i32>} : memref<8x130xf32, #tpu.memory_space<vmem>>, vector<8x128xf32>,
    %c0_46 = arith.constant 0 : index
    %c0_47 = arith.constant 0 : index
    %50 = vector.load %arg9[%c0_46, %c0_47] : memref<8x16xbf16, #tpu.memory_space<vmem>>, vector<8x16xbf16>
    %c0_48 = arith.constant 0 : index
    %c0_49 = arith.constant 0 : index
    %51 = vector.load %arg10[%c0_48, %c0_49] : memref<8x1xf32, #tpu.memory_space<vmem>>, vector<8x1xf32>
    %c0_50 = arith.constant 0 : index
    %c0_51 = arith.constant 0 : index
    %52 = vector.load %arg11[%c0_50, %c0_51] : memref<8x16xbf16, #tpu.memory_space<vmem>>, vector<8x16xbf16>
    %c0_52 = arith.constant 0 : index
    %c0_53 = arith.constant 0 : index
    %53 = vector.load %arg12[%c0_52, %c0_53] : memref<8x1xf32, #tpu.memory_space<vmem>>, vector<8x1xf32>
    %c0_54 = arith.constant 0 : index
    %c2_55 = arith.constant 2 : index
    %54 = vector.load %arg14[%c0_54, %c2_55] : memref<8x130xf32, #tpu.memory_space<vmem>>, vector<8x128xf32>
    %c0_56 = arith.constant 0 : index
    %c0_57 = arith.constant 0 : index
    %55 = vector.load %arg14[%c0_56, %c0_57] : memref<8x130xf32, #tpu.memory_space<vmem>>, vector<8x128xf32>
    %c0_58 = arith.constant 0 : index
    %c0_59 = arith.constant 0 : index
    %56 = vector.load %arg15[%c0_58, %c0_59] : memref<16x128xf32, #tpu.memory_space<vmem>>, vector<8x128xf32>
    tpu.vector_store %arg15[%c0_58, %c0_59], %55 {strides = array<i32>} : memref<16x128xf32, #tpu.memory_space<vmem>>, vector<8x128xf32>,
    %c0_60 = arith.constant 0 : index
    %c2_61 = arith.constant 2 : index
    %57 = vector.load %arg14[%c0_60, %c2_61] : memref<8x130xf32, #tpu.memory_space<vmem>>, vector<8x128xf32>
    %c8_62 = arith.constant 8 : index
    %c0_63 = arith.constant 0 : index
    %58 = vector.load %arg15[%c8_62, %c0_63] : memref<16x128xf32, #tpu.memory_space<vmem>>, vector<8x128xf32>
    tpu.vector_store %arg15[%c8_62, %c0_63], %57 {strides = array<i32>} : memref<16x128xf32, #tpu.memory_space<vmem>>, vector<8x128xf32>,
    %c0_64 = arith.constant 0 : index
    %c0_65 = arith.constant 0 : index
    %59 = vector.load %arg15[%c0_64, %c0_65] : memref<16x128xf32, #tpu.memory_space<vmem>>, vector<16x128xf32>
    %60 = arith.truncf %59 : vector<16x128xf32> to vector<16x128xbf16>
    %cst_66 = arith.constant dense<0.000000e+00> : vector<8x128xf32>
    %61 = tpu.matmul %50, %60, %cst_66 {dimension_numbers = #tpu.dot_dimension_numbers<[1], [0], [0], [1], [0, 0, 1, 1], [], []>} : vector<8x16xbf16>, vector<16x128xbf16>, vector<8x128xf32> -> vector<8x128xf32>
    %62 = vector.broadcast %51 : vector<8x1xf32> to vector<8x128xf32>
    %63 = arith.addf %61, %62 : vector<8x128xf32>
    %cst_67 = arith.constant 0.000000e+00 : f32
    %64 = vector.broadcast %cst_67 : f32 to vector<8x128xf32>
    %65 = arith.maximumf %63, %64 : vector<8x128xf32>
    %66 = vector.broadcast %1 : vector<1x128xf32> to vector<8x128xf32>
    %67 = arith.mulf %65, %66 : vector<8x128xf32>
    %c0_68 = arith.constant 0 : index
    %c2_69 = arith.constant 2 : index
    %68 = vector.load %arg14[%c0_68, %c2_69] : memref<8x130xf32, #tpu.memory_space<vmem>>, vector<8x128xf32>
    tpu.vector_store %arg14[%c0_68, %c2_69], %67 {strides = array<i32>} : memref<8x130xf32, #tpu.memory_space<vmem>>, vector<8x128xf32>,
    %c0_70 = arith.constant 0 : index
    %c0_71 = arith.constant 0 : index
    %69 = vector.load %arg14[%c0_70, %c0_71] : memref<8x130xf32, #tpu.memory_space<vmem>>, vector<8x128xf32>
    %c0_72 = arith.constant 0 : index
    %c0_73 = arith.constant 0 : index
    %70 = vector.load %arg15[%c0_72, %c0_73] : memref<16x128xf32, #tpu.memory_space<vmem>>, vector<8x128xf32>
    tpu.vector_store %arg15[%c0_72, %c0_73], %69 {strides = array<i32>} : memref<16x128xf32, #tpu.memory_space<vmem>>, vector<8x128xf32>,
    %c0_74 = arith.constant 0 : index
    %c2_75 = arith.constant 2 : index
    %71 = vector.load %arg14[%c0_74, %c2_75] : memref<8x130xf32, #tpu.memory_space<vmem>>, vector<8x128xf32>
    %c8_76 = arith.constant 8 : index
    %c0_77 = arith.constant 0 : index
    %72 = vector.load %arg15[%c8_76, %c0_77] : memref<16x128xf32, #tpu.memory_space<vmem>>, vector<8x128xf32>
    tpu.vector_store %arg15[%c8_76, %c0_77], %71 {strides = array<i32>} : memref<16x128xf32, #tpu.memory_space<vmem>>, vector<8x128xf32>,
    %c0_78 = arith.constant 0 : index
    %c0_79 = arith.constant 0 : index
    %73 = vector.load %arg15[%c0_78, %c0_79] : memref<16x128xf32, #tpu.memory_space<vmem>>, vector<16x128xf32>
    %74 = arith.truncf %73 : vector<16x128xf32> to vector<16x128xbf16>
    %cst_80 = arith.constant dense<0.000000e+00> : vector<8x128xf32>
    %75 = tpu.matmul %52, %74, %cst_80 {dimension_numbers = #tpu.dot_dimension_numbers<[1], [0], [0], [1], [0, 0, 1, 1], [], []>} : vector<8x16xbf16>, vector<16x128xbf16>, vector<8x128xf32> -> vector<8x128xf32>
    %76 = vector.broadcast %53 : vector<8x1xf32> to vector<8x128xf32>
    %77 = arith.addf %75, %76 : vector<8x128xf32>
    %cst_81 = arith.constant 0.000000e+00 : f32
    %78 = vector.broadcast %cst_81 : f32 to vector<8x128xf32>
    %79 = arith.maximumf %77, %78 : vector<8x128xf32>
    %80 = arith.addf %79, %54 : vector<8x128xf32>
    %cst_82 = arith.constant 0.000000e+00 : f32
    %81 = vector.broadcast %cst_82 : f32 to vector<8x128xf32>
    %82 = arith.maximumf %80, %81 : vector<8x128xf32>
    %83 = vector.broadcast %1 : vector<1x128xf32> to vector<8x128xf32>
    %84 = arith.mulf %82, %83 : vector<8x128xf32>
    %c0_83 = arith.constant 0 : index
    %c0_84 = arith.constant 0 : index
    %c0_85 = arith.constant 0 : index
    %85 = vector.load %arg13[%c0_83, %c0_84, %c0_85] : memref<1x8x128xf32, #tpu.memory_space<vmem>>, vector<1x8x128xf32>
    %86 = vector.shape_cast %85 : vector<1x8x128xf32> to vector<8x128xf32>
    %87 = vector.shape_cast %84 : vector<8x128xf32> to vector<1x8x128xf32>
    tpu.vector_store %arg13[%c0_83, %c0_84, %c0_85], %87 {strides = array<i32>} : memref<1x8x128xf32, #tpu.memory_space<vmem>>, vector<1x8x128xf32>,
    return
  }
  func.func @transform_0(%arg0: i32) -> (i32, i32, i32) {
    %c0_i32 = arith.constant 0 : i32
    %c0_i32_0 = arith.constant 0 : i32
    %c0_i32_1 = arith.constant 0 : i32
    return %arg0, %c0_i32, %c0_i32_0 : i32, i32, i32
  }
  func.func @transform_1(%arg0: i32) -> (i32, i32, i32) {
    %c0_i32 = arith.constant 0 : i32
    %c0_i32_0 = arith.constant 0 : i32
    %c0_i32_1 = arith.constant 0 : i32
    return %arg0, %c0_i32, %c0_i32_0 : i32, i32, i32
  }
  func.func @transform_2(%arg0: i32) -> (i32, i32) {
    %c0_i32 = arith.constant 0 : i32
    %c0_i32_0 = arith.constant 0 : i32
    %c0_i32_1 = arith.constant 0 : i32
    return %c0_i32, %c0_i32_0 : i32, i32
  }
  func.func @transform_3(%arg0: i32) -> (i32, i32) {
    %c0_i32 = arith.constant 0 : i32
    %c0_i32_0 = arith.constant 0 : i32
    %c0_i32_1 = arith.constant 0 : i32
    return %c0_i32, %c0_i32_0 : i32, i32
  }
  func.func @transform_4(%arg0: i32) -> (i32, i32) {
    %c0_i32 = arith.constant 0 : i32
    %c0_i32_0 = arith.constant 0 : i32
    %c0_i32_1 = arith.constant 0 : i32
    return %c0_i32, %c0_i32_0 : i32, i32
  }
  func.func @transform_5(%arg0: i32) -> (i32, i32) {
    %c0_i32 = arith.constant 0 : i32
    %c0_i32_0 = arith.constant 0 : i32
    %c0_i32_1 = arith.constant 0 : i32
    return %c0_i32, %c0_i32_0 : i32, i32
  }
  func.func @transform_6(%arg0: i32) -> (i32, i32) {
    %c0_i32 = arith.constant 0 : i32
    %c0_i32_0 = arith.constant 0 : i32
    %c0_i32_1 = arith.constant 0 : i32
    return %c0_i32, %c0_i32_0 : i32, i32
  }
  func.func @transform_7(%arg0: i32) -> (i32, i32) {
    %c0_i32 = arith.constant 0 : i32
    %c0_i32_0 = arith.constant 0 : i32
    %c0_i32_1 = arith.constant 0 : i32
    return %c0_i32, %c0_i32_0 : i32, i32
  }
  func.func @transform_8(%arg0: i32) -> (i32, i32) {
    %c0_i32 = arith.constant 0 : i32
    %c0_i32_0 = arith.constant 0 : i32
    %c0_i32_1 = arith.constant 0 : i32
    return %c0_i32, %c0_i32_0 : i32, i32
  }
  func.func @transform_9(%arg0: i32) -> (i32, i32) {
    %c0_i32 = arith.constant 0 : i32
    %c0_i32_0 = arith.constant 0 : i32
    %c0_i32_1 = arith.constant 0 : i32
    return %c0_i32, %c0_i32_0 : i32, i32
  }
  func.func @transform_10(%arg0: i32) -> (i32, i32) {
    %c0_i32 = arith.constant 0 : i32
    %c0_i32_0 = arith.constant 0 : i32
    %c0_i32_1 = arith.constant 0 : i32
    return %c0_i32, %c0_i32_0 : i32, i32
  }
  func.func @transform_11(%arg0: i32) -> (i32, i32) {
    %c0_i32 = arith.constant 0 : i32
    %c0_i32_0 = arith.constant 0 : i32
    %c0_i32_1 = arith.constant 0 : i32
    return %c0_i32, %c0_i32_0 : i32, i32
  }
  func.func @transform_12(%arg0: i32) -> (i32, i32, i32) {
    %c0_i32 = arith.constant 0 : i32
    %c0_i32_0 = arith.constant 0 : i32
    %c0_i32_1 = arith.constant 0 : i32
    return %arg0, %c0_i32, %c0_i32_0 : i32, i32, i32
  }
}

</mosaic_0001>

<bundles_post_ra>
// kernel: tpu_custom_call.1
= control target key start
LH: loop header
LB: loop body
LE: loop exit
PB: predicated region body
PF: predicated region fallthrough
CT: control target
= control target key end

     0   :  { %v569_v3 = vmov 0.0   ;;  %s737_s0 = inlined_call_operand.vmem [shape: f32[1,8,130], index: 0, kind: input, shape index: {}]   ;;  %s738_s1 = inlined_call_operand.vmem [shape: f32[1,1,128], index: 1, kind: input, shape index: {}]   ;;  %s739_s2 = inlined_call_operand.vmem [shape: bf16[8,16], index: 2, kind: input, shape index: {}]   ;;  %s740_s3 = inlined_call_operand.vmem [shape: f32[8,1], index: 3, kind: input, shape index: {}]   ;;  %s741_s4 = inlined_call_operand.vmem [shape: bf16[8,16], index: 4, kind: input, shape index: {}]   ;;  %s742_s5 = inlined_call_operand.vmem [shape: f32[8,1], index: 5, kind: input, shape index: {}]   ;;  %s743_s6 = inlined_call_operand.vmem [shape: bf16[8,8], index: 6, kind: input, shape index: {}]   ;;  %s744_s7 = inlined_call_operand.vmem [shape: f32[8,1], index: 7, kind: input, shape index: {}]   ;;  %s745_s8 = inlined_call_operand.vmem [shape: bf16[8,16], index: 8, kind: input, shape index: {}]   ;;  %s746_s9 = inlined_call_operand.vmem [shape: f32[8,1], index: 9, kind: input, shape index: {}]   ;;  %s747_s10 = inlined_call_operand.vmem [shape: bf16[8,16], index: 10, kind: input, shape index: {}]   ;;  %s748_s11 = inlined_call_operand.vmem [shape: f32[8,1], index: 11, kind: input, shape index: {}]   ;;  %s749_s12 = inlined_call_operand.hbm [shape: f32[1,8,128], index: 12, kind: output, shape index: {}]  }
   0x1   :  { %v56_v0 = vld [vmem:[%s737_s0] sm:$0xff]  ;;  %v57_v1 = vld [vmem:[%s737_s0 + $0x8] sm:$0xff]  ;;  %478 = vmatprep.subr.bf16.mxu0 %v569_v3  ;;  %484 = vmatprep.subr.bf16.mxu1 %v569_v3 }
   0x2   :  { %v515_v2 = vpack.i.bf16 %v57_v1, %v56_v0 }
   0x3   :  { %17 = vsyncpa [#allocation5], 0  ;;  %v51_v4 = vld [vmem:[%s740_s3] sm:$0xff]  ;;  %s570_s27 = smov 127   ;;  %vm571_vm0 = vmmov 0   ;;  %v572_v5 = vmov 0   ;;  %v223_v29 = vpack.c.bf16 %v57_v1, %v57_v1  ;;  %v222_v30 = vpack.c.bf16 %v56_v0, %v56_v0 }
   0x4   :  { %516 = vrot.lane.b32.xlu0 %v515_v2, %s570_s27  ;;  %480 = vmatprep.mubr.msk.bf16.mxu0 %vm571_vm0, %v569_v3  ;;  %s573_s0 = smov 126   ;;  %vm64_vm1 = vcmask 1039360   ;;  %vm76_vm2 = vcmask 1031168   ;;  %v50_v15 = vld [vmem:[%s739_s2] sm:$0xf]  ;;  %vm88_vm3 = vcmask 130048  }
   0x5   :  { %525 = vset.pattern.permute.xlu1 %v572_v5  ;;  %486 = vmatprep.mubr.msk.bf16.mxu1 %vm571_vm0, %v569_v3  ;;  %vm48_vm4 = vcmask 15360   ;;  %v672_v19 = vld [vmem:[%s738_s1] ss:$0 sm:$0xff]  ;;  %s574_s2 = smov 2   ;;  %vm144_vm5 = vcmask 1047568   ;;  %vm241_vm6 = vcmask 1043456  }
   0x6   :  { %85 = vperm.xlu1 %525, %v51_v4   ;;  %536 = vset.pattern.permute.xlu0 %v572_v5  ;;  %49 = vst.msk [vmem:[#allocation2] sm:$0xff] %vm48_vm4, %v569_v3  ;;  %v55_v31 = vld [vmem:[%s744_s7] sm:$0xff]  ;;  %vm237_vm7 = vcmask 64512   ;;  %s575_s21 = smov [#allocation4]  }
   0x7   :  { %v53_v32 = vld [vmem:[%s742_s5] sm:$0xff]  ;;  %s454_s22 = sshll.u32 %s575_s21, 4  ;;  %s455_s22 = int_to_ptr.vmem [resolvable:$true] %s454_s22 }
   0x8   :  { %521 = vrot.lane.b32.xlu0 %v515_v2, %s573_s0  ;;  %v52_v46 = vld [vmem:[%s741_s4] sm:$0xf]  ;;  %p552_p1 = scmp.lt.s32.totalorder %s455_s22, %s455_s22 }
   0x9   :  { %v54_v47 = vld [vmem:[%s743_s6] sm:$0xf] }
   0xa   :  { %v295_v0 = vld [vmem:[%s746_s9] sm:$0xff] }
  0x76   :  { %v517_v6 = vpop.permute.xlu0 %516 }
  0x77   :  { %v519_v7 = vunpack.i.h.bf16 %v517_v6  ;;  %v518_v8 = vunpack.i.l.bf16 %v517_v6 }
  0x79   :  { %v65_v12 = vsel %vm64_vm1, %v518_v8, %v519_v7 }
  0x7a   :  { %v522_v9 = vpop.permute.xlu0 %521 }
  0x7b   :  { %v524_v10 = vunpack.i.h.bf16 %v522_v9  ;;  %v523_v11 = vunpack.i.l.bf16 %v522_v9 }
  0x7d   :  { %v77_v13 = vsel %vm76_vm2, %v523_v11, %v524_v10  ;;  %v294_v10 = vld [vmem:[%s745_s8] sm:$0xf] }
  0x7e   :  { %v82_v14 = vpack.c.bf16 %v77_v13, %v65_v12 }
  0x80   :  { %479 = vmatpush3.bf16.msra.mxu0 %v82_v14 }
  0x81   :  { %490 = vmatprep.subr.bf16.mxu0 %v569_v3  ;;  %v86_v16 = vpop.permute.xlu1 %85 }
  0x83   :  { %481 = vmatmul.mubr.msk.bf16.vlgmr.msra.gmra.mxu0 %vm88_vm3, %v50_v15 }
  0x84   :  { %492 = vmatprep.mubr.msk.bf16.mxu0 %vm571_vm0, %v569_v3 }
 0x143   :  { %v126_v17 = vpop.f32.mrf.mxu0 }
 0x144   :  { %v127_v18 = vadd.f32 %v126_v17, %v86_v16 }
 0x145   :  { %v482_v20 = vpop.f32.mrf.mxu0 }
 0x146   :  { %v132_v21 = vmax.f32 %v127_v18, 0.0  ;;  %v297_v20 = vld [vmem:[%s748_s11] sm:$0xff] }
 0x147   :  { %v129_v22 = vpop.f32.mrf.mxu0 }
 0x148   :  { %v139_v23 = vmul.f32 %v672_v19, %v132_v21 }
 0x149   :  { %v483_v24 = vpop.f32.mrf.mxu0 }
 0x14a   :  { %141 = vrot.lane.b32.xlu1 %v139_v23, %s574_s2 }
 0x1bc   :  { %v142_v25 = vpop.permute.xlu1 %141 }
 0x1bd   :  { %145 = vst.msk [vmem:[#allocation2] sm:$0xff] %vm144_vm5, %v142_v25 }
 0x1be   :  { %147 = vst.msk [vmem:[#allocation2 + $0x8] sm:$0xff] %vm48_vm4, %v142_v25 }
 0x1c4   :  { %v159_v26 = vld [vmem:[#allocation2] sm:$0xff] }
 0x1c5   :  { %v160_v27 = vld [vmem:[#allocation2 + $0x8] sm:$0xff] }
 0x1c6   :  { %v531_v28 = vpack.i.bf16 %v160_v27, %v159_v26 }
 0x1c8   :  { %532 = vrot.lane.b32.xlu1 %v531_v28, %s573_s0  ;;  %527 = vrot.lane.b32.xlu0 %v531_v28, %s570_s27 }
 0x1cc   :  { %233 = vrot.lane.b32.xlu1 %v223_v29, %s573_s0  ;;  %231 = vrot.lane.b32.xlu0 %v222_v30, %s573_s0  ;;  %v296_v30 = vld [vmem:[%s747_s10] sm:$0xf]  ;;  %s547_s10 = scalar_lea.vmem %s455_s22, 128 }
 0x1cd   :  { %p548_p0 = scmp.ne.s32.totalorder %s455_s22, %s547_s10  ;;  %p553_p2 = scmp.lt.s32.totalorder %s547_s10, %s547_s10 }
 0x1cf   :  { %p554_p3 = por %p553_p2, %p552_p1 }
 0x1d0   :  { %226 = vperm.xlu1 %525, %v55_v31   ;;  %175 = vperm.xlu0 %536, %v53_v32  }
 0x1d1   :  { %p555_p4 = pnand %p554_p3, %p548_p0 }
 0x23a   :  { %v533_v33 = vpop.permute.xlu1 %532  ;;  %v528_v34 = vpop.permute.xlu0 %527 }
 0x23b   :  { %v535_v35 = vunpack.i.h.bf16 %v533_v33  ;;  %v534_v36 = vunpack.i.l.bf16 %v533_v33  ;;  %v530_v37 = vunpack.i.h.bf16 %v528_v34  ;;  %v529_v38 = vunpack.i.l.bf16 %v528_v34 }
 0x23d   :  { %v156_v39 = vsel %vm64_vm1, %v529_v38, %v530_v37  ;;  %v167_v40 = vsel %vm76_vm2, %v534_v36, %v535_v35 }
 0x23e   :  { %v234_v41 = vpop.permute.xlu1 %233  ;;  %v232_v42 = vpop.permute.xlu0 %231  ;;  %v172_v43 = vpack.c.bf16 %v167_v40, %v156_v39 }
 0x23f   :  { %v236_v44 = vsel %vm76_vm2, %v232_v42, %v234_v41 }
 0x240   :  { %v243_v45 = vsel %vm241_vm6, %v236_v44, 0  ;;  %485 = vmatpush3.bf16.msra.mxu1 %v172_v43 }
 0x241   :  { %491 = vmatpush3.bf16.msra.mxu0 %v243_v45  ;;  %496 = vmatprep.subr.bf16.mxu1 %v569_v3 }
 0x242   :  { %502 = vmatprep.subr.bf16.mxu0 %v569_v3 }
 0x243   :  { %487 = vmatmul.mubr.msk.bf16.vlgmr.msra.gmra.mxu1 %vm88_vm3, %v52_v46 }
 0x244   :  { %493 = vmatmul.mubr.msk.bf16.vlgmr.msra.gmra.mxu0 %vm237_vm7, %v54_v47  ;;  %498 = vmatprep.mubr.msk.bf16.mxu1 %vm571_vm0, %v569_v3 }
 0x245   :  { %504 = vmatprep.mubr.msk.bf16.mxu0 %vm571_vm0, %v569_v3 }
 0x24b   :  { %v176_v48 = vpop.permute.xlu0 %175  ;;  %v227_v50 = vpop.permute.xlu1 %226 }
 0x303   :  { %v215_v49 = vpop.f32.mrf.mxu1 }
 0x304   :  { %v216_v51 = vadd.f32 %v215_v49, %v176_v48  ;;  %v279_v52 = vpop.f32.mrf.mxu0 }
 0x305   :  { %v280_v53 = vadd.f32 %v279_v52, %v227_v50  ;;  %v488_v54 = vpop.f32.mrf.mxu1 }
 0x306   :  { %v221_v55 = vmax.f32 %v216_v51, 0.0  ;;  %v494_v56 = vpop.f32.mrf.mxu0 }
 0x307   :  { %v218_v57 = vpop.f32.mrf.mxu1 }
 0x308   :  { %v285_v58 = vadd.f32 %v280_v53, %v221_v55  ;;  %v282_v59 = vpop.f32.mrf.mxu0 }
 0x309   :  { %v489_v60 = vpop.f32.mrf.mxu1 }
 0x30a   :  { %v286_v61 = vmax.f32 %v285_v58, 0.0  ;;  %v495_v62 = vpop.f32.mrf.mxu0 }
 0x30c   :  { %v287_v63 = vmul.f32 %v672_v19, %v286_v61 }
 0x30e   :  { %289 = vrot.lane.b32.xlu1 %v287_v63, %s574_s2 }
 0x312   :  { %317 = vperm.xlu1 %525, %v295_v0  }
 0x380   :  { %v290_v1 = vpop.permute.xlu1 %289 }
 0x381   :  { %292 = vst.msk [vmem:[#allocation2] sm:$0xff] %vm144_vm5, %v290_v1 }
 0x382   :  { %293 = vst.msk [vmem:[#allocation2 + $0x8] sm:$0xff] %vm48_vm4, %v290_v1 }
 0x388   :  { %v301_v2 = vld [vmem:[#allocation2] sm:$0xff] }
 0x389   :  { %v302_v3 = vld [vmem:[#allocation2 + $0x8] sm:$0xff] }
 0x38a   :  { %v537_v4 = vpack.i.bf16 %v302_v3, %v301_v2 }
 0x38c   :  { %538 = vrot.lane.b32.xlu0 %v537_v4, %s573_s0 }
 0x38d   :  { %v318_v11 = vpop.permute.xlu1 %317 }
 0x3fe   :  { %v539_v5 = vpop.permute.xlu0 %538 }
 0x3ff   :  { %v541_v6 = vunpack.i.h.bf16 %v539_v5  ;;  %v540_v7 = vunpack.i.l.bf16 %v539_v5 }
 0x401   :  { %v309_v8 = vsel %vm76_vm2, %v540_v7, %v541_v6 }
 0x402   :  { %v314_v9 = vpack.c.bf16 %v309_v8, %v301_v2 }
 0x404   :  { %497 = vmatpush3.bf16.msra.mxu1 %v314_v9 }
 0x407   :  { %499 = vmatmul.mubr.msk.bf16.vlgmr.msra.gmra.mxu1 %vm88_vm3, %v294_v10 }
 0x4c7   :  { %v357_v12 = vpop.f32.mrf.mxu1 }
 0x4c8   :  { %v358_v13 = vadd.f32 %v357_v12, %v318_v11 }
 0x4c9   :  { %v500_v14 = vpop.f32.mrf.mxu1 }
 0x4ca   :  { %v363_v15 = vmax.f32 %v358_v13, 0.0 }
 0x4cb   :  { %v360_v16 = vpop.f32.mrf.mxu1 }
 0x4cc   :  { %v364_v17 = vmul.f32 %v672_v19, %v363_v15 }
 0x4cd   :  { %v501_v18 = vpop.f32.mrf.mxu1 }
 0x4ce   :  { %366 = vrot.lane.b32.xlu0 %v364_v17, %s574_s2 }
 0x4d2   :  { %389 = vperm.xlu0 %536, %v297_v20  }
 0x4d6   :  { %440 = vrot.lane.b32.xlu0 %v302_v3, %s573_s0 }
 0x540   :  { %v367_v21 = vpop.permute.xlu0 %366 }
 0x541   :  { %369 = vst.msk [vmem:[#allocation2] sm:$0xff] %vm144_vm5, %v367_v21 }
 0x542   :  { %370 = vst.msk [vmem:[#allocation2 + $0x8] sm:$0xff] %vm48_vm4, %v367_v21 }
 0x548   :  { %v373_v22 = vld [vmem:[#allocation2] sm:$0xff] }
 0x549   :  { %v374_v23 = vld [vmem:[#allocation2 + $0x8] sm:$0xff] }
 0x54a   :  { %v542_v24 = vpack.i.bf16 %v374_v23, %v373_v22 }
 0x54c   :  { %543 = vrot.lane.b32.xlu1 %v542_v24, %s573_s0 }
 0x54d   :  { %v390_v31 = vpop.permute.xlu0 %389 }
 0x550   :  { %438 = vrot.lane.b32.xlu1 %v301_v2, %s573_s0 }
 0x551   :  { %v441_v36 = vpop.permute.xlu0 %440 }
 0x5be   :  { %v544_v25 = vpop.permute.xlu1 %543 }
 0x5bf   :  { %v546_v26 = vunpack.i.h.bf16 %v544_v25  ;;  %v545_v27 = vunpack.i.l.bf16 %v544_v25 }
 0x5c1   :  { %v381_v28 = vsel %vm76_vm2, %v545_v27, %v546_v26 }
 0x5c2   :  { %v386_v29 = vpack.c.bf16 %v381_v28, %v373_v22  ;;  %v439_v33 = vpop.permute.xlu1 %438 }
 0x5c3   :  { %v442_v38 = vsel %vm76_vm2, %v439_v33, %v441_v36 }
 0x5c4   :  { %503 = vmatpush3.bf16.msra.mxu0 %v386_v29 }
 0x5c7   :  { %505 = vmatmul.mubr.msk.bf16.vlgmr.msra.gmra.mxu0 %vm88_vm3, %v296_v30 }
 0x687   :  { %v429_v32 = vpop.f32.mrf.mxu0 }
 0x688   :  { %v430_v34 = vadd.f32 %v429_v32, %v390_v31 }
 0x689   :  { %v506_v35 = vpop.f32.mrf.mxu0 }
 0x68a   :  { %v435_v37 = vmax.f32 %v430_v34, 0.0 }
 0x68b   :  { %v432_v39 = vpop.f32.mrf.mxu0 }
 0x68c   :  { %v444_v40 = vadd.f32 %v442_v38, %v435_v37 }
 0x68d   :  { %v507_v41 = vpop.f32.mrf.mxu0 }
 0x68e   :  { %v445_v42 = vmax.f32 %v444_v40, 0.0 }
 0x690   :  { %v446_v43 = vmul.f32 %v672_v19, %v445_v42 }
 0x692   :  { %447 = vst [vmem:[#allocation4] sm:$0xff] %v446_v43 }
 0x693   :  { %558 = shalt.err (!%p555_p4)
}
 0x694   :  { %457 = dma.vmem_to_hbm [thread:$0]  %s455_s22, 128, %s749_s12, [#allocation5]  }
 0x695   :  { %567 = dma.done.wait [#allocation5], 128  }
 0x696   :  { %568 = vsyncadd [#allocation5], 4294967168 }
 0x697   :  { %461 = vsyncpa [#allocation5], 1 }

</bundles_post_ra>
